<compile_context>
chip_gen: v7x
topology: tpu7x:2x2x1
jax: 0.10.0
libtpu: 0.0.40
codegen_flags: <defaults>
</compile_context>

<pallas_src>
import jax
import jax.numpy as jnp
from jax import lax
from jax.experimental import pallas as pl
from jax.experimental.pallas import tpu as pltpu


def _round_up(a, m):
    return -(-a // m) * m


# Tap order is (kh, kw) row-major, matching the flattened weights w[kh*3+kw].
# Slab ids:
#   0 = (even rows, even cols)          -> kw = 0 taps
#   1 = (even rows, odd  cols)          -> kw = 1 taps
#   2 = (even rows, even cols, +1 col)  -> kw = 2 taps
#   3, 4, 5 = same three for odd rows (kh = 1)
# Row offset roff = kh // 2  (kh = 2 reads the *next* even row).
_TAPS = (
    (0, 0), (1, 0), (2, 0),   # kh = 0, kw = 0..2
    (3, 0), (4, 0), (5, 0),   # kh = 1
    (0, 1), (1, 1), (2, 1),   # kh = 2
)


def _make_downsample_kernel(n_sub, sub_tr, wo_pad):
    sub_m = sub_tr * wo_pad          # GEMM rows whose accumulator lives in vregs
    m = n_sub * sub_m                # GEMM rows produced per grid step

    def kernel(slab_ref, w_ref, b_ref, o_ref):
        # slab_ref: (1, 6, He*WoPad, C) bf16  whole phase-split image (resident)
        # w_ref:    (9, C, C)           bf16  one (Cin, Cout) matrix per tap
        # b_ref:    (1, C)              f32
        # o_ref:    (1, m, C)           out rows for this tile
        r = pl.program_id(1)
        base = pl.multiple_of(r * m, m)
        bias = b_ref[...]                                  # (1, C) f32
        for ci in range(n_sub):
            acc = None
            for t, (slab, roff) in enumerate(_TAPS):
                start = pl.multiple_of(base + ci * sub_m + roff * wo_pad, 8)
                src = slab_ref[0, slab, pl.ds(start, sub_m), :]
                d = jnp.dot(src, w_ref[t], preferred_element_type=jnp.float32)
                acc = d if acc is None else acc + d        # consecutive accumulating dots
            o_ref[0, pl.ds(ci * sub_m, sub_m), :] = (acc + bias).astype(o_ref.dtype)

    return kernel


def _bspec(shape, index_map, bufs=None):
    """BlockSpec with optional explicit buffer count (graceful fallback)."""
    if bufs is None:
        return pl.BlockSpec(shape, index_map)
    try:
        return pl.BlockSpec(shape, index_map, pipeline_mode=pl.Buffered(bufs))
    except TypeError:   # older jax without pipeline_mode kwarg
        return pl.BlockSpec(shape, index_map)


def downsample_forward(x_nchw, weight_oihw, bias, t=None, *,
                       compute_dtype=jnp.bfloat16, out_layout="NCHW"):
    """Strided 3x3 conv (stride 2, pad 1), same in/out channels. NCHW in/out."""
    del t  # matches the PyTorch forward signature; unused
    B, C, H, W = x_nchw.shape
    Ho = (H - 1) // 2 + 1
    Wo = (W - 1) // 2 + 1
    wo_pad = _round_up(Wo, 8)            # sublane-aligned slab row width
    ho8 = _round_up(Ho, 8)
    lane_c = _round_up(C, 128)

    # --- generation-aware VMEM ceiling ---------------------------------------
    try:
        vmem_cap = int(pltpu.get_tpu_info().vmem_capacity_bytes)
    except Exception:
        vmem_cap = 64 * 2**20
    small_vmem = vmem_cap <= 80 * 2**20            # v7x-like (64 MiB per TC)
    ceiling = (48 if small_vmem else 100) * 2**20

    # --- tile selection -------------------------------------------------------
    # sub_tr: output rows per in-kernel chunk (accumulator stays in vregs for
    # C <= 128); n_sub chunks per grid step to amortize the ~0.35us step cost.
    acc_rows = 128 if C <= 128 else 512
    sub_tr = max(1, acc_rows // wo_pad)
    target_rows = 512 if small_vmem else 1536
    n_sub = max(1, min(16, target_rows // max(1, sub_tr * wo_pad)))
    tr = sub_tr * n_sub
    while tr > ho8 and n_sub > 1:
        n_sub -= 1
        tr = sub_tr * n_sub
    if tr > ho8:
        sub_tr, n_sub, tr = ho8, 1, ho8
    ho_pad = _round_up(Ho, tr)
    n_row_tiles = ho_pad // tr
    he = ho_pad + 1                      # even-row (and odd-row) count of padded input
    m = tr * wo_pad
    sub_m = sub_tr * wo_pad

    out_dtype = jnp.bfloat16 if x_nchw.dtype == jnp.bfloat16 else jnp.float32
    out_itemsize = 2 if out_dtype == jnp.bfloat16 else 4

    # --- layout prep (fused XLA pass: transpose + bf16 cast + pad + phase split)
    x = jnp.transpose(x_nchw, (0, 2, 3, 1)).astype(compute_dtype)   # [B, H, W, C] bf16
    hp2 = 2 * he
    wp2 = 2 * (wo_pad + 1)
    xp = jnp.pad(x, ((0, 0), (1, hp2 - H - 1), (1, wp2 - W - 1), (0, 0)))
    ee = xp[:, 0::2, 0::2, :]      # x_pad[2i,   2j  ]   [B, He, WoPad+1, C]
    eo = xp[:, 0::2, 1::2, :]      # x_pad[2i,   2j+1]
    oe = xp[:, 1::2, 0::2, :]      # x_pad[2i+1, 2j  ]
    oo = xp[:, 1::2, 1::2, :]      # x_pad[2i+1, 2j+1]
    slabs = jnp.stack(
        [ee[:, :, :wo_pad, :], eo[:, :, :wo_pad, :], ee[:, :, 1:wo_pad + 1, :],
         oe[:, :, :wo_pad, :], oo[:, :, :wo_pad, :], oe[:, :, 1:wo_pad + 1, :]],
        axis=1).reshape(B, 6, he * wo_pad, C)                        # [B,6,He*WoPad,C]

    w_taps = jnp.transpose(weight_oihw, (2, 3, 1, 0)).reshape(9, C, C)
    w_taps = w_taps.astype(compute_dtype)
    b_row = bias.reshape(1, C).astype(jnp.float32)

    # --- VMEM budget (bf16 blocks rounded to 16 sublanes, f32 to 8) -----------
    slab_block = 6 * _round_up(he * wo_pad, 16) * lane_c * 2
    w_vmem = 9 * _round_up(C, 16) * lane_c * 2                       # single-buffered
    b_vmem = 8 * 128 * 4
    out_vmem = 2 * _round_up(m, 8) * lane_c * out_itemsize           # double-buffered
    acc_vmem = 4 * _round_up(sub_m, 8) * lane_c * 4                  # acc + temps
    other = w_vmem + b_vmem + out_vmem + acc_vmem + (2 << 20)
    # Double-buffer the slab (overlap next image's DMA) only if it clearly fits.
    slab_bufs = 2 if (B > 1 and 2 * slab_block + other <= int(0.75 * ceiling)) else 1
    est = slab_bufs * slab_block + other
    vmem_limit = int(min(ceiling, max(32 * 2**20, est + est // 4)))
    # TODO(synk): for images whose single-buffered slab block exceeds the VMEM
    # ceiling, replace whole-image residency with a row-streamed, overlap-aware
    # make_async_copy pipeline (not needed at the scales this module is used at).

    flops = 2 * 9 * B * ho_pad * wo_pad * C * C
    bytes_accessed = (slabs.size * 2 + w_taps.size * 2 + b_row.size * 4
                      + B * ho_pad * wo_pad * C * out_itemsize)
    cost = pl.CostEstimate(flops=flops, transcendentals=0,
                           bytes_accessed=bytes_accessed)

    kernel = _make_downsample_kernel(n_sub, sub_tr, wo_pad)
    out = pl.pallas_call(
        kernel,
        out_shape=jax.ShapeDtypeStruct((B, ho_pad * wo_pad, C), out_dtype),
        grid_spec=pltpu.PrefetchScalarGridSpec(
            num_scalar_prefetch=0,
            grid=(B, n_row_tiles),
            in_specs=[
                _bspec((1, 6, he * wo_pad, C), lambda b, r: (b, 0, 0, 0),
                       bufs=slab_bufs),
                _bspec((9, C, C), lambda b, r: (0, 0, 0), bufs=1),
                _bspec((1, C), lambda b, r: (0, 0), bufs=1),
            ],
            out_specs=pl.BlockSpec((1, m, C), lambda b, r: (b, r, 0)),
        ),
        compiler_params=pltpu.CompilerParams(
            dimension_semantics=("parallel", "parallel"),
            vmem_limit_bytes=vmem_limit,
        ),
        cost_estimate=cost,
    )(slabs, w_taps, b_row)

    out = out.reshape(B, ho_pad, wo_pad, C)[:, :Ho, :Wo]             # NHWC
    if out_layout == "NHWC":
        return out.astype(x_nchw.dtype)
    return jnp.transpose(out, (0, 3, 1, 2)).astype(x_nchw.dtype)     # NCHW


def _reference_conv(x_nchw, weight_oihw, bias):
    y = lax.conv_general_dilated(
        x_nchw, weight_oihw,
        window_strides=(2, 2),
        padding=((1, 1), (1, 1)),
        dimension_numbers=("NCHW", "OIHW", "NCHW"),
        precision=lax.Precision.HIGHEST,
    )
    return y + bias[None, :, None, None]


if __name__ == "__main__":
    key = jax.random.PRNGKey(0)
    kx, kw, kb, kt = jax.random.split(key, 4)

    B, C, H, W = 2, 4, 16, 16
    x = jax.random.normal(kx, (B, C, H, W), dtype=jnp.float32)
    t = jax.random.normal(kt, (B, 32), dtype=jnp.float32)          # ignored by forward

    # deterministic, Conv2d-like init (uniform in +/- 1/sqrt(fan_in))
    fan_in = C * 3 * 3
    bound = 1.0 / (fan_in ** 0.5)
    weight = jax.random.uniform(kw, (C, C, 3, 3), minval=-bound, maxval=bound,
                                dtype=jnp.float32)
    bias = jax.random.uniform(kb, (C,), minval=-bound, maxval=bound,
                              dtype=jnp.float32)

    fwd = jax.jit(downsample_forward)
    y = jax.block_until_ready(fwd(x, weight, bias, t))

    Ho, Wo = (H - 1) // 2 + 1, (W - 1) // 2 + 1
    assert y.shape == (B, C, Ho, Wo), y.shape

    # structural check: reference with the same bf16-rounded operands (f32 accum)
    x_r = x.astype(jnp.bfloat16).astype(jnp.float32)
    w_r = weight.astype(jnp.bfloat16).astype(jnp.float32)
    y_ref = _reference_conv(x_r, w_r, bias)
    assert jnp.allclose(y, y_ref, atol=2e-3, rtol=2e-3), (
        "mismatch vs bf16-rounded reference, max abs err = "
        + str(float(jnp.max(jnp.abs(y - y_ref)))))

    # loose check against the full-f32 convolution (only bf16 input rounding)
    y_f32 = _reference_conv(x, weight, bias)
    assert jnp.allclose(y, y_f32, atol=1e-1, rtol=1e-1), (
        "mismatch vs f32 reference, max abs err = "
        + str(float(jnp.max(jnp.abs(y - y_f32)))))

    print("KERNEL_OK")
</pallas_src>

<mosaic_0001>
module attributes {stable_mosaic.version = 11 : i64} {
  func.func @kernel(%arg0: i32, %arg1: i32, %arg2: memref<1x6x72x4xbf16, #tpu.memory_space<vmem>>, %arg3: memref<9x4x4xbf16, #tpu.memory_space<vmem>>, %arg4: memref<1x4xf32, #tpu.memory_space<vmem>>, %arg5: memref<1x64x4xf32, #tpu.memory_space<vmem>>) attributes {dimension_semantics = [#tpu.dimension_semantics<parallel>, #tpu.dimension_semantics<parallel>], iteration_bounds = array<i64: 2, 1>, scalar_prefetch = 0 : i64, scratch_operands = 0 : i64, tpu.core_type = #tpu.core_type<tc>, window_params = [{pipeline_mode = #tpu.pipeline_mode<double_buffered>, transform_indices = @transform_0, window_bounds = array<i64: 1, 6, 72, 4>}, {pipeline_mode = #tpu.pipeline_mode<synchronous>, transform_indices = @transform_1, window_bounds = array<i64: 9, 4, 4>}, {pipeline_mode = #tpu.pipeline_mode<synchronous>, transform_indices = @transform_2, window_bounds = array<i64: 1, 4>}, {transform_indices = @transform_3, window_bounds = array<i64: 1, 64, 4>}]} {
    %c64_i32 = arith.constant 64 : i32
    %0 = arith.muli %arg1, %c64_i32 : i32
    %1 = tpu.assume_multiple %0, 64 : i32
    %c0 = arith.constant 0 : index
    %c0_0 = arith.constant 0 : index
    %2 = vector.load %arg4[%c0, %c0_0] : memref<1x4xf32, #tpu.memory_space<vmem>>, vector<1x4xf32>
    %c0_i32 = arith.constant 0 : i32
    %3 = arith.addi %1, %c0_i32 : i32
    %c0_i32_1 = arith.constant 0 : i32
    %4 = arith.addi %3, %c0_i32_1 : i32
    %5 = tpu.assume_multiple %4, 8 : i32
    %c0_2 = arith.constant 0 : index
    %c0_3 = arith.constant 0 : index
    %6 = arith.index_cast %5 : i32 to index
    %c0_4 = arith.constant 0 : index
    %7 = vector.load %arg2[%c0_2, %c0_3, %6, %c0_4] : memref<1x6x72x4xbf16, #tpu.memory_space<vmem>>, vector<1x1x64x4xbf16>
    %8 = vector.shape_cast %7 : vector<1x1x64x4xbf16> to vector<64x4xbf16>
    %c0_5 = arith.constant 0 : index
    %c0_6 = arith.constant 0 : index
    %c0_7 = arith.constant 0 : index
    %9 = vector.load %arg3[%c0_5, %c0_6, %c0_7] : memref<9x4x4xbf16, #tpu.memory_space<vmem>>, vector<1x4x4xbf16>
    %10 = vector.shape_cast %9 : vector<1x4x4xbf16> to vector<4x4xbf16>
    %cst = arith.constant dense<0.000000e+00> : vector<64x4xf32>
    %11 = tpu.matmul %8, %10, %cst {dimension_numbers = #tpu.dot_dimension_numbers<[1], [0], [0], [1], [0, 0, 1, 1], [], []>} : vector<64x4xbf16>, vector<4x4xbf16>, vector<64x4xf32> -> vector<64x4xf32>
    %c0_i32_8 = arith.constant 0 : i32
    %12 = arith.addi %1, %c0_i32_8 : i32
    %c0_i32_9 = arith.constant 0 : i32
    %13 = arith.addi %12, %c0_i32_9 : i32
    %14 = tpu.assume_multiple %13, 8 : i32
    %c0_10 = arith.constant 0 : index
    %c1 = arith.constant 1 : index
    %15 = arith.index_cast %14 : i32 to index
    %c0_11 = arith.constant 0 : index
    %16 = vector.load %arg2[%c0_10, %c1, %15, %c0_11] : memref<1x6x72x4xbf16, #tpu.memory_space<vmem>>, vector<1x1x64x4xbf16>
    %17 = vector.shape_cast %16 : vector<1x1x64x4xbf16> to vector<64x4xbf16>
    %c1_12 = arith.constant 1 : index
    %c0_13 = arith.constant 0 : index
    %c0_14 = arith.constant 0 : index
    %18 = vector.load %arg3[%c1_12, %c0_13, %c0_14] : memref<9x4x4xbf16, #tpu.memory_space<vmem>>, vector<1x4x4xbf16>
    %19 = vector.shape_cast %18 : vector<1x4x4xbf16> to vector<4x4xbf16>
    %cst_15 = arith.constant dense<0.000000e+00> : vector<64x4xf32>
    %20 = tpu.matmul %17, %19, %cst_15 {dimension_numbers = #tpu.dot_dimension_numbers<[1], [0], [0], [1], [0, 0, 1, 1], [], []>} : vector<64x4xbf16>, vector<4x4xbf16>, vector<64x4xf32> -> vector<64x4xf32>
    %21 = arith.addf %11, %20 : vector<64x4xf32>
    %c0_i32_16 = arith.constant 0 : i32
    %22 = arith.addi %1, %c0_i32_16 : i32
    %c0_i32_17 = arith.constant 0 : i32
    %23 = arith.addi %22, %c0_i32_17 : i32
    %24 = tpu.assume_multiple %23, 8 : i32
    %c0_18 = arith.constant 0 : index
    %c2 = arith.constant 2 : index
    %25 = arith.index_cast %24 : i32 to index
    %c0_19 = arith.constant 0 : index
    %26 = vector.load %arg2[%c0_18, %c2, %25, %c0_19] : memref<1x6x72x4xbf16, #tpu.memory_space<vmem>>, vector<1x1x64x4xbf16>
    %27 = vector.shape_cast %26 : vector<1x1x64x4xbf16> to vector<64x4xbf16>
    %c2_20 = arith.constant 2 : index
    %c0_21 = arith.constant 0 : index
    %c0_22 = arith.constant 0 : index
    %28 = vector.load %arg3[%c2_20, %c0_21, %c0_22] : memref<9x4x4xbf16, #tpu.memory_space<vmem>>, vector<1x4x4xbf16>
    %29 = vector.shape_cast %28 : vector<1x4x4xbf16> to vector<4x4xbf16>
    %cst_23 = arith.constant dense<0.000000e+00> : vector<64x4xf32>
    %30 = tpu.matmul %27, %29, %cst_23 {dimension_numbers = #tpu.dot_dimension_numbers<[1], [0], [0], [1], [0, 0, 1, 1], [], []>} : vector<64x4xbf16>, vector<4x4xbf16>, vector<64x4xf32> -> vector<64x4xf32>
    %31 = arith.addf %21, %30 : vector<64x4xf32>
    %c0_i32_24 = arith.constant 0 : i32
    %32 = arith.addi %1, %c0_i32_24 : i32
    %c0_i32_25 = arith.constant 0 : i32
    %33 = arith.addi %32, %c0_i32_25 : i32
    %34 = tpu.assume_multiple %33, 8 : i32
    %c0_26 = arith.constant 0 : index
    %c3 = arith.constant 3 : index
    %35 = arith.index_cast %34 : i32 to index
    %c0_27 = arith.constant 0 : index
    %36 = vector.load %arg2[%c0_26, %c3, %35, %c0_27] : memref<1x6x72x4xbf16, #tpu.memory_space<vmem>>, vector<1x1x64x4xbf16>
    %37 = vector.shape_cast %36 : vector<1x1x64x4xbf16> to vector<64x4xbf16>
    %c3_28 = arith.constant 3 : index
    %c0_29 = arith.constant 0 : index
    %c0_30 = arith.constant 0 : index
    %38 = vector.load %arg3[%c3_28, %c0_29, %c0_30] : memref<9x4x4xbf16, #tpu.memory_space<vmem>>, vector<1x4x4xbf16>
    %39 = vector.shape_cast %38 : vector<1x4x4xbf16> to vector<4x4xbf16>
    %cst_31 = arith.constant dense<0.000000e+00> : vector<64x4xf32>
    %40 = tpu.matmul %37, %39, %cst_31 {dimension_numbers = #tpu.dot_dimension_numbers<[1], [0], [0], [1], [0, 0, 1, 1], [], []>} : vector<64x4xbf16>, vector<4x4xbf16>, vector<64x4xf32> -> vector<64x4xf32>
    %41 = arith.addf %31, %40 : vector<64x4xf32>
    %c0_i32_32 = arith.constant 0 : i32
    %42 = arith.addi %1, %c0_i32_32 : i32
    %c0_i32_33 = arith.constant 0 : i32
    %43 = arith.addi %42, %c0_i32_33 : i32
    %44 = tpu.assume_multiple %43, 8 : i32
    %c0_34 = arith.constant 0 : index
    %c4 = arith.constant 4 : index
    %45 = arith.index_cast %44 : i32 to index
    %c0_35 = arith.constant 0 : index
    %46 = vector.load %arg2[%c0_34, %c4, %45, %c0_35] : memref<1x6x72x4xbf16, #tpu.memory_space<vmem>>, vector<1x1x64x4xbf16>
    %47 = vector.shape_cast %46 : vector<1x1x64x4xbf16> to vector<64x4xbf16>
    %c4_36 = arith.constant 4 : index
    %c0_37 = arith.constant 0 : index
    %c0_38 = arith.constant 0 : index
    %48 = vector.load %arg3[%c4_36, %c0_37, %c0_38] : memref<9x4x4xbf16, #tpu.memory_space<vmem>>, vector<1x4x4xbf16>
    %49 = vector.shape_cast %48 : vector<1x4x4xbf16> to vector<4x4xbf16>
    %cst_39 = arith.constant dense<0.000000e+00> : vector<64x4xf32>
    %50 = tpu.matmul %47, %49, %cst_39 {dimension_numbers = #tpu.dot_dimension_numbers<[1], [0], [0], [1], [0, 0, 1, 1], [], []>} : vector<64x4xbf16>, vector<4x4xbf16>, vector<64x4xf32> -> vector<64x4xf32>
    %51 = arith.addf %41, %50 : vector<64x4xf32>
    %c0_i32_40 = arith.constant 0 : i32
    %52 = arith.addi %1, %c0_i32_40 : i32
    %c0_i32_41 = arith.constant 0 : i32
    %53 = arith.addi %52, %c0_i32_41 : i32
    %54 = tpu.assume_multiple %53, 8 : i32
    %c0_42 = arith.constant 0 : index
    %c5 = arith.constant 5 : index
    %55 = arith.index_cast %54 : i32 to index
    %c0_43 = arith.constant 0 : index
    %56 = vector.load %arg2[%c0_42, %c5, %55, %c0_43] : memref<1x6x72x4xbf16, #tpu.memory_space<vmem>>, vector<1x1x64x4xbf16>
    %57 = vector.shape_cast %56 : vector<1x1x64x4xbf16> to vector<64x4xbf16>
    %c5_44 = arith.constant 5 : index
    %c0_45 = arith.constant 0 : index
    %c0_46 = arith.constant 0 : index
    %58 = vector.load %arg3[%c5_44, %c0_45, %c0_46] : memref<9x4x4xbf16, #tpu.memory_space<vmem>>, vector<1x4x4xbf16>
    %59 = vector.shape_cast %58 : vector<1x4x4xbf16> to vector<4x4xbf16>
    %cst_47 = arith.constant dense<0.000000e+00> : vector<64x4xf32>
    %60 = tpu.matmul %57, %59, %cst_47 {dimension_numbers = #tpu.dot_dimension_numbers<[1], [0], [0], [1], [0, 0, 1, 1], [], []>} : vector<64x4xbf16>, vector<4x4xbf16>, vector<64x4xf32> -> vector<64x4xf32>
    %61 = arith.addf %51, %60 : vector<64x4xf32>
    %c0_i32_48 = arith.constant 0 : i32
    %62 = arith.addi %1, %c0_i32_48 : i32
    %c8_i32 = arith.constant 8 : i32
    %63 = arith.addi %62, %c8_i32 : i32
    %64 = tpu.assume_multiple %63, 8 : i32
    %c0_49 = arith.constant 0 : index
    %c0_50 = arith.constant 0 : index
    %65 = arith.index_cast %64 : i32 to index
    %c0_51 = arith.constant 0 : index
    %66 = vector.load %arg2[%c0_49, %c0_50, %65, %c0_51] : memref<1x6x72x4xbf16, #tpu.memory_space<vmem>>, vector<1x1x64x4xbf16>
    %67 = vector.shape_cast %66 : vector<1x1x64x4xbf16> to vector<64x4xbf16>
    %c6 = arith.constant 6 : index
    %c0_52 = arith.constant 0 : index
    %c0_53 = arith.constant 0 : index
    %68 = vector.load %arg3[%c6, %c0_52, %c0_53] : memref<9x4x4xbf16, #tpu.memory_space<vmem>>, vector<1x4x4xbf16>
    %69 = vector.shape_cast %68 : vector<1x4x4xbf16> to vector<4x4xbf16>
    %cst_54 = arith.constant dense<0.000000e+00> : vector<64x4xf32>
    %70 = tpu.matmul %67, %69, %cst_54 {dimension_numbers = #tpu.dot_dimension_numbers<[1], [0], [0], [1], [0, 0, 1, 1], [], []>} : vector<64x4xbf16>, vector<4x4xbf16>, vector<64x4xf32> -> vector<64x4xf32>
    %71 = arith.addf %61, %70 : vector<64x4xf32>
    %c0_i32_55 = arith.constant 0 : i32
    %72 = arith.addi %1, %c0_i32_55 : i32
    %c8_i32_56 = arith.constant 8 : i32
    %73 = arith.addi %72, %c8_i32_56 : i32
    %74 = tpu.assume_multiple %73, 8 : i32
    %c0_57 = arith.constant 0 : index
    %c1_58 = arith.constant 1 : index
    %75 = arith.index_cast %74 : i32 to index
    %c0_59 = arith.constant 0 : index
    %76 = vector.load %arg2[%c0_57, %c1_58, %75, %c0_59] : memref<1x6x72x4xbf16, #tpu.memory_space<vmem>>, vector<1x1x64x4xbf16>
    %77 = vector.shape_cast %76 : vector<1x1x64x4xbf16> to vector<64x4xbf16>
    %c7 = arith.constant 7 : index
    %c0_60 = arith.constant 0 : index
    %c0_61 = arith.constant 0 : index
    %78 = vector.load %arg3[%c7, %c0_60, %c0_61] : memref<9x4x4xbf16, #tpu.memory_space<vmem>>, vector<1x4x4xbf16>
    %79 = vector.shape_cast %78 : vector<1x4x4xbf16> to vector<4x4xbf16>
    %cst_62 = arith.constant dense<0.000000e+00> : vector<64x4xf32>
    %80 = tpu.matmul %77, %79, %cst_62 {dimension_numbers = #tpu.dot_dimension_numbers<[1], [0], [0], [1], [0, 0, 1, 1], [], []>} : vector<64x4xbf16>, vector<4x4xbf16>, vector<64x4xf32> -> vector<64x4xf32>
    %81 = arith.addf %71, %80 : vector<64x4xf32>
    %c0_i32_63 = arith.constant 0 : i32
    %82 = arith.addi %1, %c0_i32_63 : i32
    %c8_i32_64 = arith.constant 8 : i32
    %83 = arith.addi %82, %c8_i32_64 : i32
    %84 = tpu.assume_multiple %83, 8 : i32
    %c0_65 = arith.constant 0 : index
    %c2_66 = arith.constant 2 : index
    %85 = arith.index_cast %84 : i32 to index
    %c0_67 = arith.constant 0 : index
    %86 = vector.load %arg2[%c0_65, %c2_66, %85, %c0_67] : memref<1x6x72x4xbf16, #tpu.memory_space<vmem>>, vector<1x1x64x4xbf16>
    %87 = vector.shape_cast %86 : vector<1x1x64x4xbf16> to vector<64x4xbf16>
    %c8 = arith.constant 8 : index
    %c0_68 = arith.constant 0 : index
    %c0_69 = arith.constant 0 : index
    %88 = vector.load %arg3[%c8, %c0_68, %c0_69] : memref<9x4x4xbf16, #tpu.memory_space<vmem>>, vector<1x4x4xbf16>
    %89 = vector.shape_cast %88 : vector<1x4x4xbf16> to vector<4x4xbf16>
    %cst_70 = arith.constant dense<0.000000e+00> : vector<64x4xf32>
    %90 = tpu.matmul %87, %89, %cst_70 {dimension_numbers = #tpu.dot_dimension_numbers<[1], [0], [0], [1], [0, 0, 1, 1], [], []>} : vector<64x4xbf16>, vector<4x4xbf16>, vector<64x4xf32> -> vector<64x4xf32>
    %91 = arith.addf %81, %90 : vector<64x4xf32>
    %92 = vector.broadcast %2 : vector<1x4xf32> to vector<64x4xf32>
    %93 = arith.addf %91, %92 : vector<64x4xf32>
    %c0_71 = arith.constant 0 : index
    %c0_72 = arith.constant 0 : index
    %c0_73 = arith.constant 0 : index
    %94 = vector.load %arg5[%c0_71, %c0_72, %c0_73] : memref<1x64x4xf32, #tpu.memory_space<vmem>>, vector<1x64x4xf32>
    %95 = vector.shape_cast %94 : vector<1x64x4xf32> to vector<64x4xf32>
    %96 = vector.shape_cast %93 : vector<64x4xf32> to vector<1x64x4xf32>
    tpu.vector_store %arg5[%c0_71, %c0_72, %c0_73], %96 {strides = array<i32>} : memref<1x64x4xf32, #tpu.memory_space<vmem>>, vector<1x64x4xf32>,
    return
  }
  func.func @transform_0(%arg0: i32, %arg1: i32) -> (i32, i32, i32, i32) {
    %c0_i32 = arith.constant 0 : i32
    %c0_i32_0 = arith.constant 0 : i32
    %c0_i32_1 = arith.constant 0 : i32
    %c0_i32_2 = arith.constant 0 : i32
    return %arg0, %c0_i32, %c0_i32_0, %c0_i32_1 : i32, i32, i32, i32
  }
  func.func @transform_1(%arg0: i32, %arg1: i32) -> (i32, i32, i32) {
    %c0_i32 = arith.constant 0 : i32
    %c0_i32_0 = arith.constant 0 : i32
    %c0_i32_1 = arith.constant 0 : i32
    %c0_i32_2 = arith.constant 0 : i32
    return %c0_i32, %c0_i32_0, %c0_i32_1 : i32, i32, i32
  }
  func.func @transform_2(%arg0: i32, %arg1: i32) -> (i32, i32) {
    %c0_i32 = arith.constant 0 : i32
    %c0_i32_0 = arith.constant 0 : i32
    %c0_i32_1 = arith.constant 0 : i32
    return %c0_i32, %c0_i32_0 : i32, i32
  }
  func.func @transform_3(%arg0: i32, %arg1: i32) -> (i32, i32, i32) {
    %c0_i32 = arith.constant 0 : i32
    %c0_i32_0 = arith.constant 0 : i32
    return %arg0, %arg1, %c0_i32 : i32, i32, i32
  }
}

</mosaic_0001>

<bundles_post_ra>
// kernel: downsample_forward.1
= control target key start
LH: loop header
LB: loop body
LE: loop exit
PB: predicated region body
PF: predicated region fallthrough
CT: control target
= control target key end

     0   :  { %s1876_s12 = smov 0   ;;  %s1878_s13 = smov 0   ;;  %s2063_s0 = inlined_call_operand.vmem [shape: bf16[2,6,72,4], index: 0, kind: input, shape index: {}]   ;;  %s2064_s1 = inlined_call_operand.vmem [shape: bf16[9,4,4], index: 1, kind: input, shape index: {}]   ;;  %s2065_s2 = inlined_call_operand.vmem [shape: f32[1,4], index: 2, kind: input, shape index: {}]   ;;  %s2066_s3 = inlined_call_operand.vmem [shape: f32[2,64,4], index: 3, kind: output, shape index: {}]  }
   0x1   :  { %s1880_s14 = smov 0  }
   0x2 LB: > { %s25_s15 = sadd.s32 1, %s1850_s13  ;;  %p1406_p0 = scmp.ge.s32.totalorder %s1854_s14, 1  ;;  %s1854_s14 = sphi %s1880_s14, %s13_s14   ;;  %s1850_s13 = sphi %s1878_s13, %s2068_s13   ;;  %s1846_s12 = sphi %s1876_s12, %s2067_s12  }
   0x3   : > { %p27_p1 = scmp.ge.s32.totalorder %s25_s15, 2  ;;  %p151_p2 = scmp.lt.s32.totalorder %s1854_s14, 3 }
   0x5   : > { %s2070_s15 = smov (%p27_p1, %s25_s15), 0  ;;  %p152_p3 = pnand %p1406_p0, %p151_p2 }
   0x6   : > { %v1418_v0 = vld [vmem:[%s2064_s1 + $0x2] sm:$0x3] (!%p152_p3)  ;;  %vm256_vm0 = vcmask (!%p152_p3), 1041408   ;;  %v1900_v1 = vld [vmem:[%s2064_s1 + $0x8] sm:$0x3] (!%p152_p3)  ;;  %p179_p4 = scmp.lt.s32.totalorder (!%p152_p3), %s1846_s12, 1 }
   0x7   : > { %155 = sbr.rel (%p152_p3) target bundleno = 308 (0x134), region = 32  ;;  %1761 = vmatprep.subr.msk.bf16.mxu1 (!%p152_p3), %vm256_vm0, %v1418_v0  ;;  %1765 = vmatprep.subr.msk.bf16.mxu0 (!%p152_p3), %vm256_vm0, %v1900_v1  ;;  %v258_v2 = vsel (!%p152_p3), %vm256_vm0, %v1418_v0, 0  ;;  %v1908_v3 = vsel (!%p152_p3), %vm256_vm0, %v1900_v1, 0  ;;  %v209_v4 = vld [vmem:[%s2064_s1] sm:$0x3] (!%p152_p3)  ;;  %vm243_vm1 = vcmask (!%p152_p3), 31744  }
   0x8   : > { %1606 = vmatpush3.bf16.msra.mxu1 (!%p152_p3), %v258_v2  ;;  %1646 = vmatpush3.bf16.msra.mxu0 (!%p152_p3), %v1908_v3  ;;  %v1494_v5 = vld [vmem:[%s2064_s1 + $0xa] sm:$0x3] (!%p152_p3)  ;;  %v358_v9 = vsel (!%p152_p3), %vm256_vm0, %v209_v4, 0  ;;  %v1511_v10 = vld [vmem:[%s2064_s1 + $0xc] sm:$0x3] (!%p152_p3) }
   0x9   : > { %1762 = vmatprep.subr.msk.bf16.mxu1 (!%p152_p3), %vm256_vm0, %v209_v4  ;;  %1767 = vmatprep.subr.msk.bf16.mxu0 (!%p152_p3), %vm256_vm0, %v1494_v5  ;;  %v1443_v11 = vld [vmem:[%s2064_s1 + $0x4] sm:$0x3] (!%p152_p3)  ;;  %v834_v13 = vsel (!%p152_p3), %vm256_vm0, %v1494_v5, 0  ;;  %v957_v19 = vsel (!%p152_p3), %vm256_vm0, %v1511_v10, 0  ;;  %v1529_v21 = vld [vmem:[%s2064_s1 + $0xe] sm:$0x3] (!%p152_p3) }
   0xa   : > { %v471_v24 = vsel (!%p152_p3), %vm256_vm0, %v1443_v11, 0  ;;  %v1460_v25 = vld [vmem:[%s2064_s1 + $0x6] sm:$0x3] (!%p152_p3)  ;;  %v1078_v31 = vsel (!%p152_p3), %vm256_vm0, %v1529_v21, 0  ;;  %v1547_v33 = vld [vmem:[%s2064_s1 + $0x10] sm:$0x3] (!%p152_p3) }
   0xb   : > { %v592_v36 = vsel (!%p152_p3), %vm256_vm0, %v1460_v25, 0  ;;  %v1199_v43 = vsel (!%p152_p3), %vm256_vm0, %v1547_v33, 0  ;;  %v1556_v58 = vld [vmem:[%s2065_s2] ss:$0 sm:$0xff] (!%p152_p3) }
   0xe   : > { %s2072_s12 = smov (!%p179_p4, %s1846_s12), 1 }
   0xf   : > { %s1771_s24 = smul.u32 216, %s2072_s12  ;;  %s1559_s11 = sshll.u32 %s2072_s12, 6 }
  0x10   : > { %s2036_s20 = scalar_lea.vmem %s2066_s3, %s1559_s11 }
  0x11   : > { %s1925_s27 = scalar_lea.vmem %s2063_s0, %s1771_s24 }
  0x12   : > { %v1796_v6 = vld [vmem:[%s1925_s27 + $0x24] sm:$0xff]   ;;  %v1797_v7 = vld [vmem:[%s1925_s27 + $0x90] sm:$0xff]   ;;  %v1799_v12 = vld [vmem:[%s1925_s27 + $0x98] sm:$0xff]  }
  0x13   : > { %1607 = vmatprep.mubr.msk.bf16.mxu1 %vm243_vm1, %v1796_v6  ;;  %v1798_v8 = vld [vmem:[%s1925_s27 + $0x2c] sm:$0xff]   ;;  %1647 = vmatprep.mubr.msk.bf16.mxu0 %vm243_vm1, %v1797_v7  ;;  %v1800_v14 = vld [vmem:[%s1925_s27 + $0x34] sm:$0xff]   ;;  %v1801_v16 = vld [vmem:[%s1925_s27 + $0x3c] sm:$0xff]  }
  0x14   : > { %1608 = vmatmul.mubr.msk.bf16.vlgmr.msra.gmra.mrb[0].mxu1 %vm243_vm1, %v1798_v8  ;;  %1648 = vmatmul.mubr.msk.bf16.vlgmr.msra.gmra.mrb[0].mxu0 %vm243_vm1, %v1799_v12  ;;  %v1802_v15 = vld [vmem:[%s1925_s27 + $0xb4] sm:$0xff]   ;;  %v1804_v17 = vld [vmem:[%s1925_s27] sm:$0xff]   ;;  %v1805_v22 = vld [vmem:[%s1925_s27 + $0x8] sm:$0xff]  }
  0x15   : > { %1616 = vmatpush3.bf16.msra.mxu1 %v358_v9  ;;  %1656 = vmatpush3.bf16.msra.mxu0 %v834_v13  ;;  %v1803_v18 = vld [vmem:[%s1925_s27 + $0xbc] sm:$0xff]   ;;  %v1806_v20 = vld [vmem:[%s1925_s27 + $0xc4] sm:$0xff]   ;;  %v1808_v23 = vld [vmem:[%s1925_s27 + $0x10] sm:$0xff]  }
  0x16   : > { %1611 = vmatprep.mubr.msk.bf16.mxu1 %vm243_vm1, %v1800_v14  ;;  %1768 = vmatprep.subr.msk.bf16.mxu0 %vm256_vm0, %v1511_v10  ;;  %v1807_v26 = vld [vmem:[%s1925_s27 + $0xcc] sm:$0xff]   ;;  %v1810_v27 = vld [vmem:[%s1925_s27 + $0x4] sm:$0xff]   ;;  %v1809_v28 = vld [vmem:[%s1925_s27 + $0x18] sm:$0xff]  }
  0x17   : > { %1763 = vmatprep.subr.msk.bf16.mxu1 %vm256_vm0, %v1443_v11  ;;  %1657 = vmatprep.mubr.msk.bf16.mxu0 %vm243_vm1, %v1802_v15  ;;  %v1812_v29 = vld [vmem:[%s1925_s27 + $0x48] sm:$0xff]   ;;  %v1814_v32 = vld [vmem:[%s1925_s27 + $0x14] sm:$0xff]   ;;  %v1815_v37 = vld [vmem:[%s1925_s27 + $0x1c] sm:$0xff]  }
  0x18   : > { %v1811_v30 = vld [vmem:[%s1925_s27 + $0xc] sm:$0xff]   ;;  %v1816_v35 = vld [vmem:[%s1925_s27 + $0x58] sm:$0xff]   ;;  %v1817_v39 = vld [vmem:[%s1925_s27 + $0x60] sm:$0xff]  }
  0x19   : > { %v1813_v34 = vld [vmem:[%s1925_s27 + $0x50] sm:$0xff]   ;;  %v1818_v38 = vld [vmem:[%s1925_s27 + $0x28] sm:$0xff]   ;;  %v1822_v42 = vld [vmem:[%s1925_s27 + $0x38] sm:$0xff]  }
  0x1a   : > { %v1820_v40 = vld [vmem:[%s1925_s27 + $0x6c] sm:$0xff]   ;;  %v1821_v44 = vld [vmem:[%s1925_s27 + $0x74] sm:$0xff]   ;;  %v1824_v45 = vld [vmem:[%s1925_s27 + $0x7c] sm:$0xff]  }
  0x1b   : > { %v1819_v41 = vld [vmem:[%s1925_s27 + $0x30] sm:$0xff]   ;;  %v1823_v46 = vld [vmem:[%s1925_s27 + $0x40] sm:$0xff]   ;;  %v1830_v52 = vld [vmem:[%s1925_s27 + $0xa8] sm:$0xff]  }
  0x1c   : > { %1612 = vmatmul.mubr.msk.bf16.gmra.mrb[4].mxu1 %vm243_vm1, %v1801_v16  ;;  %v1826_v47 = vld [vmem:[%s1925_s27 + $0x4c] sm:$0xff]   ;;  %v1825_v48 = vld [vmem:[%s1925_s27 + $0x84] sm:$0xff]   ;;  %v1827_v50 = vld [vmem:[%s1925_s27 + $0x54] sm:$0xff]  }
  0x1d   : > { %1617 = vmatprep.mubr.msk.bf16.mxu1 %vm243_vm1, %v1804_v17  ;;  %v1828_v49 = vld [vmem:[%s1925_s27 + $0xa0] sm:$0xff]  }
  0x1e   : > { %v1829_v51 = vld [vmem:[%s1925_s27 + $0x5c] sm:$0xff]   ;;  %v1831_v53 = vld [vmem:[%s1925_s27 + $0x64] sm:$0xff]  }
  0x20   : > { %1658 = vmatmul.mubr.msk.bf16.vlgmr.msra.gmra.mrb[0].mxu0 %vm243_vm1, %v1803_v18 }
  0x21   : > { %1666 = vmatpush3.bf16.msra.mxu0 %v957_v19  ;;  %1661 = vmatprep.mubr.msk.bf16.mxu0 %vm243_vm1, %v1806_v20 }
  0x22   : > { %1769 = vmatprep.subr.msk.bf16.mxu0 %vm256_vm0, %v1529_v21 }
  0x24   : > { %1618 = vmatmul.mubr.msk.bf16.vlgmr.msra.gmra.mrb[0].mxu1 %vm243_vm1, %v1805_v22 }
  0x25   : > { %1626 = vmatpush3.bf16.msra.mxu1 %v471_v24  ;;  %1621 = vmatprep.mubr.msk.bf16.mxu1 %vm243_vm1, %v1808_v23 }
  0x26   : > { %1764 = vmatprep.subr.msk.bf16.mxu1 %vm256_vm0, %v1460_v25 }
  0x28   : > { %1662 = vmatmul.mubr.msk.bf16.gmra.mrb[4].mxu0 %vm243_vm1, %v1807_v26 }
  0x29   : > { %1667 = vmatprep.mubr.msk.bf16.mxu0 %vm243_vm1, %v1810_v27 }
  0x2c   : > { %1622 = vmatmul.mubr.msk.bf16.gmra.mrb[4].mxu1 %vm243_vm1, %v1809_v28 }
  0x2d   : > { %1627 = vmatprep.mubr.msk.bf16.mxu1 %vm243_vm1, %v1812_v29 }
  0x30   : > { %1668 = vmatmul.mubr.msk.bf16.vlgmr.msra.gmra.mrb[0].mxu0 %vm243_vm1, %v1811_v30 }
  0x31   : > { %1676 = vmatpush3.bf16.msra.mxu0 %v1078_v31  ;;  %1671 = vmatprep.mubr.msk.bf16.mxu0 %vm243_vm1, %v1814_v32 }
  0x32   : > { %1770 = vmatprep.subr.msk.bf16.mxu0 %vm256_vm0, %v1547_v33 }
  0x34   : > { %1628 = vmatmul.mubr.msk.bf16.vlgmr.msra.gmra.mrb[0].mxu1 %vm243_vm1, %v1813_v34 }
  0x35   : > { %1636 = vmatpush3.bf16.msra.mxu1 %v592_v36  ;;  %1631 = vmatprep.mubr.msk.bf16.mxu1 %vm243_vm1, %v1816_v35 }
  0x36   : > { %1766 = vmatprep.subr.msk.bf16.mxu1 %vm256_vm0, %v1900_v1 }
  0x38   : > { %1672 = vmatmul.mubr.msk.bf16.gmra.mrb[4].mxu0 %vm243_vm1, %v1815_v37 }
  0x39   : > { %1677 = vmatprep.mubr.msk.bf16.mxu0 %vm243_vm1, %v1818_v38 }
  0x3c   : > { %1632 = vmatmul.mubr.msk.bf16.gmra.mrb[4].mxu1 %vm243_vm1, %v1817_v39 }
  0x3d   : > { %1637 = vmatprep.mubr.msk.bf16.mxu1 %vm243_vm1, %v1820_v40 }
  0x40   : > { %1678 = vmatmul.mubr.msk.bf16.vlgmr.msra.gmra.mrb[0].mxu0 %vm243_vm1, %v1819_v41 }
  0x41   : > { %1686 = vmatpush3.bf16.msra.mxu0 %v1199_v43  ;;  %1681 = vmatprep.mubr.msk.bf16.mxu0 %vm243_vm1, %v1822_v42 }
  0x44   : > { %1638 = vmatmul.mubr.msk.bf16.vlgmr.msra.gmra.mrb[0].mxu1 %vm243_vm1, %v1821_v44 }
  0x45   : > { %1696 = vmatpush3.bf16.msra.mxu1 %v1908_v3  ;;  %1641 = vmatprep.mubr.msk.bf16.mxu1 %vm243_vm1, %v1824_v45 }
  0x48   : > { %1682 = vmatmul.mubr.msk.bf16.gmra.mrb[4].mxu0 %vm243_vm1, %v1823_v46 }
  0x49   : > { %1687 = vmatprep.mubr.msk.bf16.mxu0 %vm243_vm1, %v1826_v47 }
  0x4c   : > { %1642 = vmatmul.mubr.msk.bf16.gmra.mrb[4].mxu1 %vm243_vm1, %v1825_v48 }
  0x4d   : > { %1651 = vmatprep.mubr.msk.bf16.mxu1 %vm243_vm1, %v1828_v49 }
  0x50   : > { %1688 = vmatmul.mubr.msk.bf16.vlgmr.msra.gmra.mrb[0].mxu0 %vm243_vm1, %v1827_v50 }
  0x51   : > { %1691 = vmatprep.mubr.msk.bf16.mxu0 %vm243_vm1, %v1829_v51 }
  0x58   : > { %1652 = vmatmul.mubr.msk.bf16.vlgmr.msra.gmra.mrb[4].mxu1 %vm243_vm1, %v1830_v52  ;;  %1692 = vmatmul.mubr.msk.bf16.gmra.mrb[4].mxu0 %vm243_vm1, %v1831_v53 }
 0x117   : > { %v1639_v54 = vpop.f32.mrb[0].mxu1 }
 0x118   : > { %v628_v55 = vpop.f32.mrb[1].mxu1 }
 0x119   : > { %v1640_v56 = vpop.f32.mrb[2].mxu1 }
 0x11a   : > { %v631_v57 = vpop.f32.mrb[3].mxu1 }
 0x123   : > { %v1689_v59 = vpop.f32.mrb[0].mxu0 }
 0x124   : > { %v1697_v60 = vadd.f32 %v1689_v59, %v1639_v54  ;;  %v1235_v61 = vpop.f32.mrb[1].mxu0 }
 0x125   : > { %v1698_v62 = vadd.f32 %v1235_v61, %v628_v55  ;;  %v1690_v63 = vpop.f32.mrb[2].mxu0 }
 0x126   : > { %v1282_v0 = vadd.f32 %v1697_v60, %v1556_v58  ;;  %v1699_v1 = vadd.f32 %v1690_v63, %v1640_v56  ;;  %v1238_v2 = vpop.f32.mrb[3].mxu0 }
 0x127   : > { %v1280_v3 = vadd.f32 %v1698_v62, %v1556_v58  ;;  %v1700_v4 = vadd.f32 %v1238_v2, %v631_v57 }
 0x128   : > { %1290 = vst.msk [vmem:[%s2036_s20 + $0x10] sm:$0xff] %vm243_vm1, %v1282_v0  ;;  %v1283_v5 = vadd.f32 %v1699_v1, %v1556_v58 }
 0x129   : > { %1288 = vst.msk [vmem:[%s2036_s20] sm:$0xff] %vm243_vm1, %v1280_v3  ;;  %v1281_v6 = vadd.f32 %v1700_v4, %v1556_v58 }
 0x12a   : > { %1291 = vst.msk [vmem:[%s2036_s20 + $0x18] sm:$0xff] %vm243_vm1, %v1283_v5 }
 0x12b   : > { %v1653_v7 = vpop.f32.mrb[4].mxu1  ;;  %1289 = vst.msk [vmem:[%s2036_s20 + $0x8] sm:$0xff] %vm243_vm1, %v1281_v6  ;;  %v1693_v8 = vpop.f32.mrb[4].mxu0 }
 0x12c   : > { %v765_v9 = vpop.f32.mrb[5].mxu1  ;;  %v1701_v10 = vadd.f32 %v1693_v8, %v1653_v7  ;;  %v1251_v11 = vpop.f32.mrb[5].mxu0 }
 0x12d   : > { %v1654_v12 = vpop.f32.mrb[6].mxu1  ;;  %v1702_v13 = vadd.f32 %v1251_v11, %v765_v9  ;;  %v1694_v14 = vpop.f32.mrb[6].mxu0 }
 0x12e   : > { %v768_v15 = vpop.f32.mrb[7].mxu1  ;;  %v1286_v16 = vadd.f32 %v1701_v10, %v1556_v58  ;;  %v1703_v17 = vadd.f32 %v1694_v14, %v1654_v12  ;;  %v1254_v18 = vpop.f32.mrb[7].mxu0 }
 0x12f   : > { %v1284_v19 = vadd.f32 %v1702_v13, %v1556_v58  ;;  %v1704_v20 = vadd.f32 %v1254_v18, %v768_v15 }
 0x130   : > { %1294 = vst.msk [vmem:[%s2036_s20 + $0x30] sm:$0xff] %vm243_vm1, %v1286_v16  ;;  %v1287_v21 = vadd.f32 %v1703_v17, %v1556_v58 }
 0x131   : > { %1292 = vst.msk [vmem:[%s2036_s20 + $0x20] sm:$0xff] %vm243_vm1, %v1284_v19  ;;  %v1285_v22 = vadd.f32 %v1704_v20, %v1556_v58 }
 0x132   : > { %1295 = vst.msk [vmem:[%s2036_s20 + $0x38] sm:$0xff] %vm243_vm1, %v1287_v21 }
 0x133   : > { %1293 = vst.msk [vmem:[%s2036_s20 + $0x28] sm:$0xff] %vm243_vm1, %v1285_v22 }
 0x134 PF: > { %s13_s14 = sadd.s32 1, %s1854_s14   ;;  %s2067_s12 = smov %s1850_s13 }
 0x135   : > { %p10_p5 = scmp.ge.s32.totalorder %s13_s14, 4   ;;  %s2068_s13 = smov %s2070_s15 }
 0x137   :  { %12 = sbr.rel (!%p10_p5) target bundleno = 2 (0x2), region = 79 }

</bundles_post_ra>
